<compile_context>
chip_gen: v7x
topology: tpu7x:2x2x1
jax: 0.10.0
libtpu: 0.0.40
codegen_flags: <defaults>
</compile_context>

<pallas_src>
import jax
import jax.numpy as jnp
from jax.experimental import pallas as pl
from jax.experimental.pallas import tpu as pltpu

LANE = 128          # TPU lane width
BF16_SUBLANE = 16   # bf16 sublane packing -> batch tile must be a multiple


def _round_up(n, m):
    return ((n + m - 1) // m) * m


def _mlp_kernel(x_ref, w1_ref, b1_ref, w2_ref, b2_ref, w3_ref, b3_ref, o_ref):
    # All matmuls: bf16 operands on the MXU, f32 accumulation.
    # Epilogue (bias add + ReLU) stays f32.
    x = x_ref[...]

    # fc1 + ReLU   (dropout1 == identity in eval mode)
    h1 = jnp.dot(x, w1_ref[...], preferred_element_type=jnp.float32) + b1_ref[...]
    h1 = jnp.maximum(h1, 0.0)

    # fc2 + ReLU   (dropout2 == identity in eval mode)
    h2 = jnp.dot(h1.astype(w2_ref.dtype), w2_ref[...],
                 preferred_element_type=jnp.float32) + b2_ref[...]
    h2 = jnp.maximum(h2, 0.0)

    # fc3 (no activation)
    out = jnp.dot(h2.astype(w3_ref.dtype), w3_ref[...],
                  preferred_element_type=jnp.float32) + b3_ref[...]
    o_ref[...] = out.astype(o_ref.dtype)


def mlp_forward(x, padded_params, output_dim, *, batch_tile=128):
    """Fused 3-layer MLP forward.

    x: [B, input_dim] float32.
    padded_params: output of prepare_params() (bf16 weights, f32 biases,
                   hidden/output lane-padded).
    Returns [B, output_dim] float32.
    """
    w1, b1, w2, b2, w3, b3 = padded_params
    B, input_dim = x.shape
    hidden_p = w1.shape[1]
    out_p = w3.shape[1]

    # Batch tiling: multiple of 16 (bf16 sublane packing). Pad the batch so
    # the grid divides evenly; slice the padding off at the end.
    tile = min(batch_tile, _round_up(B, BF16_SUBLANE))
    b_pad = _round_up(B, tile)

    xb = x.astype(jnp.bfloat16)
    if b_pad != B:
        xb = jnp.pad(xb, ((0, b_pad - B), (0, 0)))

    grid = (b_pad // tile,)
    full2d = lambda shape: pl.BlockSpec(shape, lambda i: (0, 0))

    out = pl.pallas_call(
        _mlp_kernel,
        out_shape=jax.ShapeDtypeStruct((b_pad, out_p), jnp.float32),
        grid_spec=pltpu.PrefetchScalarGridSpec(
            num_scalar_prefetch=0,
            grid=grid,
            in_specs=[
                pl.BlockSpec((tile, input_dim), lambda i: (i, 0)),  # x tile
                full2d((input_dim, hidden_p)),   # w1 (bf16)
                full2d((1, hidden_p)),           # b1 (f32)
                full2d((hidden_p, hidden_p)),    # w2 (bf16)
                full2d((1, hidden_p)),           # b2 (f32)
                full2d((hidden_p, out_p)),       # w3 (bf16)
                full2d((1, out_p)),              # b3 (f32)
            ],
            out_specs=pl.BlockSpec((tile, out_p), lambda i: (i, 0)),
        ),
        compiler_params=pltpu.CompilerParams(
            dimension_semantics=("parallel",),
            vmem_limit_bytes=32 * 1024 * 1024,
        ),
    )(xb, w1, b1, w2, b2, w3, b3)

    return out[:B, :output_dim]


def init_params(key, input_dim, output_dim, hidden_size=400):
    """Deterministic init mirroring nn.Linear's U(-1/sqrt(fan_in), 1/sqrt(fan_in)).

    Weights stored as [in_features, out_features] (transposed vs PyTorch) so the
    kernel does plain x @ W + b on the MXU.
    """
    def linear(k, fan_in, fan_out):
        kw, kb = jax.random.split(k)
        bound = 1.0 / jnp.sqrt(jnp.float32(fan_in))
        w = jax.random.uniform(kw, (fan_in, fan_out), jnp.float32, -bound, bound)
        b = jax.random.uniform(kb, (1, fan_out), jnp.float32, -bound, bound)
        return w, b

    k1, k2, k3 = jax.random.split(key, 3)
    w1, b1 = linear(k1, input_dim, hidden_size)
    w2, b2 = linear(k2, hidden_size, hidden_size)
    w3, b3 = linear(k3, hidden_size, output_dim)
    return (w1, b1, w2, b2, w3, b3)


def prepare_params(params):
    """Zero-pad hidden/output dims to multiples of 128 and cast the MXU weight
    operands to bf16 (done once, outside the kernel). Biases stay f32."""
    w1, b1, w2, b2, w3, b3 = params
    input_dim, hidden = w1.shape
    output_dim = w3.shape[1]
    hidden_p = _round_up(hidden, LANE)      # 400 -> 512
    out_p = _round_up(output_dim, LANE)     # 16  -> 128 (lane-dense stores)

    def pad2d(a, rows, cols):
        return jnp.pad(a, ((0, rows - a.shape[0]), (0, cols - a.shape[1])))

    w1p = pad2d(w1, input_dim, hidden_p).astype(jnp.bfloat16)
    w2p = pad2d(w2, hidden_p, hidden_p).astype(jnp.bfloat16)
    w3p = pad2d(w3, hidden_p, out_p).astype(jnp.bfloat16)
    b1p = pad2d(b1, 1, hidden_p)
    b2p = pad2d(b2, 1, hidden_p)
    b3p = pad2d(b3, 1, out_p)
    return (w1p, b1p, w2p, b2p, w3p, b3p)


def _reference(x, params):
    """Pure-JAX reference matching the kernel numerics (bf16 operands,
    f32 accumulation), on the unpadded parameters."""
    w1, b1, w2, b2, w3, b3 = params
    bf = jnp.bfloat16
    h1 = jnp.maximum(
        jnp.dot(x.astype(bf), w1.astype(bf), preferred_element_type=jnp.float32) + b1, 0.0)
    h2 = jnp.maximum(
        jnp.dot(h1.astype(bf), w2.astype(bf), preferred_element_type=jnp.float32) + b2, 0.0)
    return jnp.dot(h2.astype(bf), w3.astype(bf), preferred_element_type=jnp.float32) + b3


if __name__ == "__main__":
    key = jax.random.PRNGKey(0)
    kx, kp = jax.random.split(key)

    batch, input_dim, hidden_size, output_dim = 16, 64, 400, 16

    x = jax.random.normal(kx, (batch, input_dim), jnp.float32)
    params = init_params(kp, input_dim, output_dim, hidden_size)
    padded_params = prepare_params(params)

    out = mlp_forward(x, padded_params, output_dim, batch_tile=128)
    out = jax.block_until_ready(out)

    ref = _reference(x, params)
    assert out.shape == (batch, output_dim)
    assert jnp.allclose(out, ref, atol=1e-2, rtol=1e-2), "mismatch vs reference"

    print("KERNEL_OK")
</pallas_src>

<mosaic_0001>
module attributes {stable_mosaic.version = 11 : i64} {
  func.func @_mlp_kernel(%arg0: i32, %arg1: memref<16x64xbf16, #tpu.memory_space<vmem>>, %arg2: memref<64x512xbf16, #tpu.memory_space<vmem>>, %arg3: memref<1x512xf32, #tpu.memory_space<vmem>>, %arg4: memref<512x512xbf16, #tpu.memory_space<vmem>>, %arg5: memref<1x512xf32, #tpu.memory_space<vmem>>, %arg6: memref<512x128xbf16, #tpu.memory_space<vmem>>, %arg7: memref<1x128xf32, #tpu.memory_space<vmem>>, %arg8: memref<16x128xf32, #tpu.memory_space<vmem>>) attributes {dimension_semantics = [#tpu.dimension_semantics<parallel>], iteration_bounds = array<i64: 1>, scalar_prefetch = 0 : i64, scratch_operands = 0 : i64, tpu.core_type = #tpu.core_type<tc>, window_params = [{transform_indices = @transform_0, window_bounds = array<i64: 16, 64>}, {pipeline_mode = #tpu.pipeline_mode<synchronous>, transform_indices = @transform_1, window_bounds = array<i64: 64, 512>}, {pipeline_mode = #tpu.pipeline_mode<synchronous>, transform_indices = @transform_2, window_bounds = array<i64: 1, 512>}, {pipeline_mode = #tpu.pipeline_mode<synchronous>, transform_indices = @transform_3, window_bounds = array<i64: 512, 512>}, {pipeline_mode = #tpu.pipeline_mode<synchronous>, transform_indices = @transform_4, window_bounds = array<i64: 1, 512>}, {pipeline_mode = #tpu.pipeline_mode<synchronous>, transform_indices = @transform_5, window_bounds = array<i64: 512, 128>}, {pipeline_mode = #tpu.pipeline_mode<synchronous>, transform_indices = @transform_6, window_bounds = array<i64: 1, 128>}, {transform_indices = @transform_7, window_bounds = array<i64: 16, 128>}]} {
    %c0 = arith.constant 0 : index
    %c0_0 = arith.constant 0 : index
    %0 = vector.load %arg1[%c0, %c0_0] : memref<16x64xbf16, #tpu.memory_space<vmem>>, vector<16x64xbf16>
    %c0_1 = arith.constant 0 : index
    %c0_2 = arith.constant 0 : index
    %1 = vector.load %arg2[%c0_1, %c0_2] : memref<64x512xbf16, #tpu.memory_space<vmem>>, vector<64x512xbf16>
    %cst = arith.constant dense<0.000000e+00> : vector<16x512xf32>
    %2 = tpu.matmul %0, %1, %cst {dimension_numbers = #tpu.dot_dimension_numbers<[1], [0], [0], [1], [0, 0, 1, 1], [], []>} : vector<16x64xbf16>, vector<64x512xbf16>, vector<16x512xf32> -> vector<16x512xf32>
    %c0_3 = arith.constant 0 : index
    %c0_4 = arith.constant 0 : index
    %3 = vector.load %arg3[%c0_3, %c0_4] : memref<1x512xf32, #tpu.memory_space<vmem>>, vector<1x512xf32>
    %4 = vector.broadcast %3 : vector<1x512xf32> to vector<16x512xf32>
    %5 = arith.addf %2, %4 : vector<16x512xf32>
    %cst_5 = arith.constant 0.000000e+00 : f32
    %6 = vector.broadcast %cst_5 : f32 to vector<16x512xf32>
    %7 = arith.maximumf %5, %6 : vector<16x512xf32>
    %8 = arith.truncf %7 : vector<16x512xf32> to vector<16x512xbf16>
    %c0_6 = arith.constant 0 : index
    %c0_7 = arith.constant 0 : index
    %9 = vector.load %arg4[%c0_6, %c0_7] : memref<512x512xbf16, #tpu.memory_space<vmem>>, vector<512x512xbf16>
    %cst_8 = arith.constant dense<0.000000e+00> : vector<16x512xf32>
    %10 = tpu.matmul %8, %9, %cst_8 {dimension_numbers = #tpu.dot_dimension_numbers<[1], [0], [0], [1], [0, 0, 1, 1], [], []>} : vector<16x512xbf16>, vector<512x512xbf16>, vector<16x512xf32> -> vector<16x512xf32>
    %c0_9 = arith.constant 0 : index
    %c0_10 = arith.constant 0 : index
    %11 = vector.load %arg5[%c0_9, %c0_10] : memref<1x512xf32, #tpu.memory_space<vmem>>, vector<1x512xf32>
    %12 = vector.broadcast %11 : vector<1x512xf32> to vector<16x512xf32>
    %13 = arith.addf %10, %12 : vector<16x512xf32>
    %cst_11 = arith.constant 0.000000e+00 : f32
    %14 = vector.broadcast %cst_11 : f32 to vector<16x512xf32>
    %15 = arith.maximumf %13, %14 : vector<16x512xf32>
    %16 = arith.truncf %15 : vector<16x512xf32> to vector<16x512xbf16>
    %c0_12 = arith.constant 0 : index
    %c0_13 = arith.constant 0 : index
    %17 = vector.load %arg6[%c0_12, %c0_13] : memref<512x128xbf16, #tpu.memory_space<vmem>>, vector<512x128xbf16>
    %cst_14 = arith.constant dense<0.000000e+00> : vector<16x128xf32>
    %18 = tpu.matmul %16, %17, %cst_14 {dimension_numbers = #tpu.dot_dimension_numbers<[1], [0], [0], [1], [0, 0, 1, 1], [], []>} : vector<16x512xbf16>, vector<512x128xbf16>, vector<16x128xf32> -> vector<16x128xf32>
    %c0_15 = arith.constant 0 : index
    %c0_16 = arith.constant 0 : index
    %19 = vector.load %arg7[%c0_15, %c0_16] : memref<1x128xf32, #tpu.memory_space<vmem>>, vector<1x128xf32>
    %20 = vector.broadcast %19 : vector<1x128xf32> to vector<16x128xf32>
    %21 = arith.addf %18, %20 : vector<16x128xf32>
    %c0_17 = arith.constant 0 : index
    %c0_18 = arith.constant 0 : index
    %22 = vector.load %arg8[%c0_17, %c0_18] : memref<16x128xf32, #tpu.memory_space<vmem>>, vector<16x128xf32>
    tpu.vector_store %arg8[%c0_17, %c0_18], %21 {strides = array<i32>} : memref<16x128xf32, #tpu.memory_space<vmem>>, vector<16x128xf32>,
    return
  }
  func.func @transform_0(%arg0: i32) -> (i32, i32) {
    %c0_i32 = arith.constant 0 : i32
    %c0_i32_0 = arith.constant 0 : i32
    return %arg0, %c0_i32 : i32, i32
  }
  func.func @transform_1(%arg0: i32) -> (i32, i32) {
    %c0_i32 = arith.constant 0 : i32
    %c0_i32_0 = arith.constant 0 : i32
    %c0_i32_1 = arith.constant 0 : i32
    return %c0_i32, %c0_i32_0 : i32, i32
  }
  func.func @transform_2(%arg0: i32) -> (i32, i32) {
    %c0_i32 = arith.constant 0 : i32
    %c0_i32_0 = arith.constant 0 : i32
    %c0_i32_1 = arith.constant 0 : i32
    return %c0_i32, %c0_i32_0 : i32, i32
  }
  func.func @transform_3(%arg0: i32) -> (i32, i32) {
    %c0_i32 = arith.constant 0 : i32
    %c0_i32_0 = arith.constant 0 : i32
    %c0_i32_1 = arith.constant 0 : i32
    return %c0_i32, %c0_i32_0 : i32, i32
  }
  func.func @transform_4(%arg0: i32) -> (i32, i32) {
    %c0_i32 = arith.constant 0 : i32
    %c0_i32_0 = arith.constant 0 : i32
    %c0_i32_1 = arith.constant 0 : i32
    return %c0_i32, %c0_i32_0 : i32, i32
  }
  func.func @transform_5(%arg0: i32) -> (i32, i32) {
    %c0_i32 = arith.constant 0 : i32
    %c0_i32_0 = arith.constant 0 : i32
    %c0_i32_1 = arith.constant 0 : i32
    return %c0_i32, %c0_i32_0 : i32, i32
  }
  func.func @transform_6(%arg0: i32) -> (i32, i32) {
    %c0_i32 = arith.constant 0 : i32
    %c0_i32_0 = arith.constant 0 : i32
    %c0_i32_1 = arith.constant 0 : i32
    return %c0_i32, %c0_i32_0 : i32, i32
  }
  func.func @transform_7(%arg0: i32) -> (i32, i32) {
    %c0_i32 = arith.constant 0 : i32
    %c0_i32_0 = arith.constant 0 : i32
    return %arg0, %c0_i32 : i32, i32
  }
}

</mosaic_0001>

<bundles_post_ra>
// kernel: tpu_custom_call.1
= control target key start
LH: loop header
LB: loop body
LE: loop exit
PB: predicated region body
PF: predicated region fallthrough
CT: control target
= control target key end

     0   :  { %12 = vsyncpa [#allocation3], 0  ;;  %s2437_s0 = inlined_call_operand.hbm [shape: bf16[16,64], index: 0, kind: input, shape index: {}]   ;;  %s2438_s1 = inlined_call_operand.hbm [shape: bf16[64,512], index: 1, kind: input, shape index: {}]   ;;  %s2439_s2 = inlined_call_operand.vmem [shape: f32[1,512], index: 2, kind: input, shape index: {}]   ;;  %s2440_s3 = inlined_call_operand.hbm [shape: bf16[512,512], index: 3, kind: input, shape index: {}]   ;;  %s2441_s4 = inlined_call_operand.vmem [shape: f32[1,512], index: 4, kind: input, shape index: {}]   ;;  %s2442_s5 = inlined_call_operand.hbm [shape: bf16[512,128], index: 5, kind: input, shape index: {}]   ;;  %s2443_s6 = inlined_call_operand.vmem [shape: f32[1,128], index: 6, kind: input, shape index: {}]   ;;  %s2444_s7 = inlined_call_operand.hbm [shape: f32[16,128], index: 7, kind: output, shape index: {}]  }
   0x1   :  { %13 = vsyncpa [#allocation6], 0 }
   0x2   :  { %14 = vsyncpa [#allocation9], 0 }
   0x3   :  { %15 = vsyncpa [#allocation4], 0  ;;  %s2269_s24 = smov [#allocation5]   ;;  %s2151_s28 = scalar_lea.hbm %s2438_s1, 2048 }
   0x4   :  { %s33_s25 = sshll.u32 %s2269_s24, 4  ;;  %p2152_p0 = scmp.ne.s32.totalorder %s2438_s1, %s2151_s28  ;;  %s34_s25 = int_to_ptr.vmem [resolvable:$true] %s33_s25 }
   0x5   :  { %p2155_p1 = scmp.lt.u32.totalorder %s2151_s28, %s2438_s1 }
   0x7   :  { %p2157_p2 = pnand %p2155_p1, %p2152_p0 }
   0x9   :  { %2160 = shalt.err (!%p2157_p2)
}
   0xa   :  { %s2161_s10 = scalar_lea.vmem %s34_s25, 2048  ;;  %p2166_p4 = scmp.lt.s32.totalorder %s34_s25, %s34_s25 }
   0xb   :  { %p2162_p3 = scmp.ne.s32.totalorder %s34_s25, %s2161_s10  ;;  %p2167_p5 = scmp.lt.s32.totalorder %s2161_s10, %s2161_s10 }
   0xd   :  { %p2168_p6 = por %p2167_p5, %p2166_p4 }
   0xf   :  { %p2169_p7 = pnand %p2168_p6, %p2162_p3 }
  0x11   :  { %2172 = shalt.err (!%p2169_p7)
}
  0x12   :  { %s2270_s11 = smov 256   ;;  %s2271_s12 = smov 16  }
  0x13   :  { %39 = dma.hbm_to_vmem [thread:$0]  %s2438_s1, 2048, %s34_s25, [#allocation6], %s2270_s11, %s2270_s11, %s2271_s12  }
  0x14   :  { %s2272_s15 = smov [#allocation2]   ;;  %s2173_s19 = scalar_lea.hbm %s2437_s0, 128 }
  0x15   :  { %s21_s16 = sshll.u32 %s2272_s15, 4  ;;  %p2174_p8 = scmp.ne.s32.totalorder %s2437_s0, %s2173_s19  ;;  %s22_s16 = int_to_ptr.vmem [resolvable:$true] %s21_s16 }
  0x16   :  { %p2177_p9 = scmp.lt.u32.totalorder %s2173_s19, %s2437_s0 }
  0x18   :  { %p2179_p10 = pnand %p2177_p9, %p2174_p8 }
  0x1a   :  { %2182 = shalt.err (!%p2179_p10)
}
  0x1b   :  { %s2183_s24 = scalar_lea.vmem %s22_s16, 128  ;;  %p2188_p12 = scmp.lt.s32.totalorder %s22_s16, %s22_s16 }
  0x1c   :  { %p2184_p11 = scmp.ne.s32.totalorder %s22_s16, %s2183_s24  ;;  %p2189_p13 = scmp.lt.s32.totalorder %s2183_s24, %s2183_s24 }
  0x1e   :  { %p2190_p0 = por %p2189_p13, %p2188_p12 }
  0x20   :  { %p2191_p1 = pnand %p2190_p0, %p2184_p11 }
  0x22   :  { %2194 = shalt.err (!%p2191_p1)
}
  0x23   :  { %s2273_s1 = smov 64   ;;  %s2274_s25 = smov 4  }
  0x24   :  { %27 = dma.hbm_to_vmem [thread:$0]  %s2437_s0, 128, %s22_s16, [#allocation3], %s2273_s1, %s2273_s1, %s2274_s25  }
  0x25   :  { %s2275_s28 = smov [#allocation7]   ;;  %s2276_s30 = smov [#allocation8]  }
  0x26   :  { %s47_s29 = sshll.u32 %s2275_s28, 4  ;;  %s61_s8 = sshll.u32 %s2276_s30, 4  ;;  %s48_s29 = int_to_ptr.vmem [resolvable:$true] %s47_s29  ;;  %s2351_s8 = int_to_ptr.vmem [resolvable:$true] %s61_s8 }
  0x27   :  { %s2195_s13 = scalar_lea.hbm %s2440_s3, 16384 }
  0x28   :  { %p2196_p2 = scmp.ne.s32.totalorder %s2440_s3, %s2195_s13  ;;  %p2199_p3 = scmp.lt.u32.totalorder %s2195_s13, %s2440_s3 }
  0x2a   :  { %p2201_p4 = pnand %p2199_p3, %p2196_p2 }
  0x2c   :  { %2204 = shalt.err (!%p2201_p4)
}
  0x2d   :  { %s2205_s0 = scalar_lea.vmem %s48_s29, 16384  ;;  %p2210_p6 = scmp.lt.s32.totalorder %s48_s29, %s48_s29 }
  0x2e   :  { %p2206_p5 = scmp.ne.s32.totalorder %s48_s29, %s2205_s0  ;;  %p2211_p7 = scmp.lt.s32.totalorder %s2205_s0, %s2205_s0 }
  0x30   :  { %p2212_p8 = por %p2211_p7, %p2210_p6 }
  0x32   :  { %p2213_p9 = pnand %p2212_p8, %p2206_p5 }
  0x34   :  { %2216 = shalt.err (!%p2213_p9)
}
  0x35   :  { %53 = dma.hbm_to_vmem [thread:$0]  %s2440_s3, 16384, %s48_s29, [#allocation6], %s2270_s11, %s2270_s11, %s2271_s12  }
  0x36   :  { %s2217_s22 = scalar_lea.hbm %s2442_s5, 4096 }
  0x37   :  { %p2218_p10 = scmp.ne.s32.totalorder %s2442_s5, %s2217_s22  ;;  %p2221_p11 = scmp.lt.u32.totalorder %s2217_s22, %s2442_s5 }
  0x39   :  { %p2223_p12 = pnand %p2221_p11, %p2218_p10 }
  0x3b   :  { %2226 = shalt.err (!%p2223_p12)
}
  0x3c   :  { %s2227_s28 = scalar_lea.vmem %s2351_s8, 4096  ;;  %p2232_p0 = scmp.lt.s32.totalorder %s2351_s8, %s2351_s8 }
  0x3d   :  { %p2228_p13 = scmp.ne.s32.totalorder %s2351_s8, %s2227_s28  ;;  %p2233_p1 = scmp.lt.s32.totalorder %s2227_s28, %s2227_s28 }
  0x3f   :  { %p2234_p2 = por %p2233_p1, %p2232_p0 }
  0x41   :  { %p2235_p3 = pnand %p2234_p2, %p2228_p13 }
  0x43   :  { %2238 = shalt.err (!%p2235_p3)
}
  0x44   :  { %67 = dma.hbm_to_vmem [thread:$0]  %s2442_s5, 4096, %s2351_s8, [#allocation9], %s2273_s1, %s2273_s1, %s2274_s25  }
  0x45   :  { %2261 = dma.done.wait [#allocation3], 128  }
  0x46   :  { %2262 = vsyncadd [#allocation3], 4294967168 }
  0x47   :  { %2263 = dma.done.wait [#allocation6], 18432  }
  0x48   :  { %2264 = vsyncadd [#allocation6], 4294948864 }
  0x49   :  { %2265 = dma.done.wait [#allocation9], 4096  }
  0x4a   :  { %2266 = vsyncadd [#allocation9], 4294963200  ;;  %v2277_v0 = vmov 0   ;;  %v1902_v1 = vld [vmem:[#allocation5 + $0x4] ss:$16 sps:$4 sm:$0xff]   ;;  %v1914_v15 = vld [vmem:[#allocation2] sm:$0xff]  }
  0x4b   :  { %244 = vmatprep.mubr.bf16.mxu0 %v2277_v0  ;;  %287 = vmatprep.mubr.bf16.mxu1 %v2277_v0  ;;  %v1904_v2 = vld [vmem:[#allocation5] ss:$16 sps:$4 sm:$0xff]   ;;  %v1905_v3 = vld [vmem:[#allocation5 + $0x24] ss:$16 sps:$4 sm:$0xff]   ;;  %v1915_v7 = vld [vmem:[#allocation5 + $0xc] ss:$16 sps:$4 sm:$0xff]  }
  0x4c   :  { %212 = vmatprep.subr.bf16.mxu0 %v1902_v1  ;;  %v1907_v4 = vld [vmem:[#allocation5 + $0x20] ss:$16 sps:$4 sm:$0xff]   ;;  %v1908_v5 = vld [vmem:[#allocation5 + $0x44] ss:$16 sps:$4 sm:$0xff]   ;;  %v1917_v8 = vld [vmem:[#allocation5 + $0x8] ss:$16 sps:$4 sm:$0xff]   ;;  %255 = vmatprep.subr.bf16.mxu1 %v1915_v7 }
  0x4d   :  { %213 = vmatpush1.bf16.msra.mxu0 %v1904_v2  ;;  %v1910_v6 = vld [vmem:[#allocation5 + $0x40] ss:$16 sps:$4 sm:$0xff]   ;;  %v1911_v9 = vld [vmem:[#allocation5 + $0x64] ss:$16 sps:$4 sm:$0xff]   ;;  %v1918_v10 = vld [vmem:[#allocation5 + $0x2c] ss:$16 sps:$4 sm:$0xff]   ;;  %256 = vmatpush1.bf16.msra.mxu1 %v1917_v8 }
  0x4e   :  { %214 = vmatprep.subr.bf16.mxu0 %v1905_v3  ;;  %v1920_v11 = vld [vmem:[#allocation5 + $0x28] ss:$16 sps:$4 sm:$0xff]   ;;  %v1913_v12 = vld [vmem:[#allocation5 + $0x60] ss:$16 sps:$4 sm:$0xff]   ;;  %257 = vmatprep.subr.bf16.mxu1 %v1918_v10  ;;  %v1921_v13 = vld [vmem:[#allocation5 + $0x4c] ss:$16 sps:$4 sm:$0xff]  }
  0x4f   :  { %v1929_v14 = vld [vmem:[#allocation7 + $0x4] ss:$16 sps:$4 sm:$0xff]   ;;  %v1923_v16 = vld [vmem:[#allocation5 + $0x48] ss:$16 sps:$4 sm:$0xff]   ;;  %vm208_vm0 = vcmask 523264   ;;  %s2278_s29 = smov [#allocation10]  }
  0x50   :  { %v1924_v17 = vld [vmem:[#allocation5 + $0x6c] ss:$16 sps:$4 sm:$0xff]   ;;  %v1927_v18 = vld [vmem:[#allocation7] ss:$16 sps:$4 sm:$0xff]   ;;  %v1935_v19 = vld [vmem:[#allocation7 + $0x24] ss:$16 sps:$4 sm:$0xff]  }
  0x51   :  { %215 = vmatpush1.bf16.msra.mxu0 %v1907_v4  ;;  %258 = vmatpush1.bf16.msra.mxu1 %v1920_v11  ;;  %v1926_v20 = vld [vmem:[#allocation5 + $0x68] ss:$16 sps:$4 sm:$0xff]   ;;  %v1932_v21 = vld [vmem:[#allocation7 + $0xc] ss:$16 sps:$4 sm:$0xff]   ;;  %v1933_v22 = vld [vmem:[#allocation7 + $0x20] ss:$16 sps:$4 sm:$0xff]  }
  0x52   :  { %216 = vmatprep.subr.bf16.mxu0 %v1908_v5  ;;  %259 = vmatprep.subr.bf16.mxu1 %v1921_v13  ;;  %v1941_v23 = vld [vmem:[#allocation7 + $0x44] ss:$16 sps:$4 sm:$0xff]   ;;  %v1930_v24 = vld [vmem:[#allocation7 + $0x8] ss:$16 sps:$4 sm:$0xff]   ;;  %v1938_v25 = vld [vmem:[#allocation7 + $0x2c] ss:$16 sps:$4 sm:$0xff]  }
  0x53   :  { %v1939_v26 = vld [vmem:[#allocation7 + $0x40] ss:$16 sps:$4 sm:$0xff]   ;;  %v1947_v27 = vld [vmem:[#allocation7 + $0x64] ss:$16 sps:$4 sm:$0xff]   ;;  %v1936_v28 = vld [vmem:[#allocation7 + $0x28] ss:$16 sps:$4 sm:$0xff]  }
  0x54   :  { %v1944_v29 = vld [vmem:[#allocation7 + $0x4c] ss:$16 sps:$4 sm:$0xff]   ;;  %v1945_v30 = vld [vmem:[#allocation7 + $0x60] ss:$16 sps:$4 sm:$0xff]   ;;  %v1953_v31 = vld [vmem:[#allocation7 + $0x84] ss:$16 sps:$4 sm:$0xff]  }
  0x55   :  { %217 = vmatpush1.bf16.msra.mxu0 %v1910_v6  ;;  %260 = vmatpush1.bf16.msra.mxu1 %v1923_v16  ;;  %v1942_v32 = vld [vmem:[#allocation7 + $0x48] ss:$16 sps:$4 sm:$0xff]   ;;  %v1950_v33 = vld [vmem:[#allocation7 + $0x6c] ss:$16 sps:$4 sm:$0xff]   ;;  %v1951_v34 = vld [vmem:[#allocation7 + $0x80] ss:$16 sps:$4 sm:$0xff]  }
  0x56   :  { %218 = vmatprep.subr.bf16.mxu0 %v1911_v9  ;;  %261 = vmatprep.subr.bf16.mxu1 %v1924_v17  ;;  %v1959_v35 = vld [vmem:[#allocation7 + $0xa4] ss:$16 sps:$4 sm:$0xff]   ;;  %v1948_v36 = vld [vmem:[#allocation7 + $0x68] ss:$16 sps:$4 sm:$0xff]   ;;  %v1956_v37 = vld [vmem:[#allocation7 + $0x8c] ss:$16 sps:$4 sm:$0xff]  }
  0x57   :  { %v1957_v38 = vld [vmem:[#allocation7 + $0xa0] ss:$16 sps:$4 sm:$0xff]   ;;  %v1965_v39 = vld [vmem:[#allocation7 + $0xc4] ss:$16 sps:$4 sm:$0xff]   ;;  %v1954_v40 = vld [vmem:[#allocation7 + $0x88] ss:$16 sps:$4 sm:$0xff]  }
  0x58   :  { %v1962_v41 = vld [vmem:[#allocation7 + $0xac] ss:$16 sps:$4 sm:$0xff]   ;;  %v1963_v42 = vld [vmem:[#allocation7 + $0xc0] ss:$16 sps:$4 sm:$0xff]   ;;  %v1971_v43 = vld [vmem:[#allocation7 + $0xe4] ss:$16 sps:$4 sm:$0xff]  }
  0x59   :  { %219 = vmatpush1.bf16.msra.mxu0 %v1913_v12  ;;  %262 = vmatpush1.bf16.msra.mxu1 %v1926_v20  ;;  %v1960_v44 = vld [vmem:[#allocation7 + $0xa8] ss:$16 sps:$4 sm:$0xff]   ;;  %v1968_v45 = vld [vmem:[#allocation7 + $0xcc] ss:$16 sps:$4 sm:$0xff]   ;;  %v1969_v46 = vld [vmem:[#allocation7 + $0xe0] ss:$16 sps:$4 sm:$0xff]   ;;  %v103_v20 = vlaneseq }
  0x5a   :  { %1100 = vmatprep.subr.bf16.mxu0 %v1929_v14  ;;  %1186 = vmatprep.subr.bf16.mxu1 %v1932_v21  ;;  %v1977_v47 = vld [vmem:[#allocation7 + $0x104] ss:$16 sps:$4 sm:$0xff]   ;;  %v1966_v48 = vld [vmem:[#allocation7 + $0xc8] ss:$16 sps:$4 sm:$0xff]   ;;  %v1974_v49 = vld [vmem:[#allocation7 + $0xec] ss:$16 sps:$4 sm:$0xff]  }
  0x5b   :  { %v1975_v50 = vld [vmem:[#allocation7 + $0x100] ss:$16 sps:$4 sm:$0xff]   ;;  %v1972_v51 = vld [vmem:[#allocation7 + $0xe8] ss:$16 sps:$4 sm:$0xff]   ;;  %v1983_v52 = vld [vmem:[#allocation7 + $0x124] ss:$16 sps:$4 sm:$0xff]  }
  0x5c   :  { %1667 = vmatmul.mubr.msk.bf16.vlgmr.msra.gmra.mrb[0].mxu0 %vm208_vm0, %v1914_v15  ;;  %1668 = vmatmul.mubr.msk.bf16.vlgmr.msra.gmra.mrb[0].mxu1 %vm208_vm0, %v1914_v15  ;;  %v1980_v53 = vld [vmem:[#allocation7 + $0x10c] ss:$16 sps:$4 sm:$0xff]   ;;  %v1981_v54 = vld [vmem:[#allocation7 + $0x120] ss:$16 sps:$4 sm:$0xff]   ;;  %v1989_v55 = vld [vmem:[#allocation7 + $0x144] ss:$16 sps:$4 sm:$0xff]  }
  0x5d   :  { %1101 = vmatpush1.bf16.msra.mxu0 %v1927_v18  ;;  %1187 = vmatpush1.bf16.msra.mxu1 %v1930_v24  ;;  %v1978_v56 = vld [vmem:[#allocation7 + $0x108] ss:$16 sps:$4 sm:$0xff]   ;;  %v1986_v57 = vld [vmem:[#allocation7 + $0x12c] ss:$16 sps:$4 sm:$0xff]   ;;  %v1987_v58 = vld [vmem:[#allocation7 + $0x140] ss:$16 sps:$4 sm:$0xff]  }
  0x5e   :  { %1102 = vmatprep.subr.bf16.mxu0 %v1935_v19  ;;  %1188 = vmatprep.subr.bf16.mxu1 %v1938_v25  ;;  %v1995_v59 = vld [vmem:[#allocation7 + $0x164] ss:$16 sps:$4 sm:$0xff]   ;;  %v1984_v60 = vld [vmem:[#allocation7 + $0x128] ss:$16 sps:$4 sm:$0xff]   ;;  %v1992_v61 = vld [vmem:[#allocation7 + $0x14c] ss:$16 sps:$4 sm:$0xff]  }
  0x5f   :  { %v1993_v62 = vld [vmem:[#allocation7 + $0x160] ss:$16 sps:$4 sm:$0xff]   ;;  %v2001_v63 = vld [vmem:[#allocation7 + $0x184] ss:$16 sps:$4 sm:$0xff]   ;;  %v1990_v0 = vld [vmem:[#allocation7 + $0x148] ss:$16 sps:$4 sm:$0xff]  }
  0x60   :  { %v1998_v1 = vld [vmem:[#allocation7 + $0x16c] ss:$16 sps:$4 sm:$0xff]   ;;  %v1999_v2 = vld [vmem:[#allocation7 + $0x180] ss:$16 sps:$4 sm:$0xff]   ;;  %v2007_v3 = vld [vmem:[#allocation7 + $0x1a4] ss:$16 sps:$4 sm:$0xff]  }
  0x61   :  { %1103 = vmatpush1.bf16.msra.mxu0 %v1933_v22  ;;  %1189 = vmatpush1.bf16.msra.mxu1 %v1936_v28  ;;  %v1996_v4 = vld [vmem:[#allocation7 + $0x168] ss:$16 sps:$4 sm:$0xff]   ;;  %v2004_v5 = vld [vmem:[#allocation7 + $0x18c] ss:$16 sps:$4 sm:$0xff]   ;;  %v2005_v6 = vld [vmem:[#allocation7 + $0x1a0] ss:$16 sps:$4 sm:$0xff]  }
  0x62   :  { %1104 = vmatprep.subr.bf16.mxu0 %v1941_v23  ;;  %1190 = vmatprep.subr.bf16.mxu1 %v1944_v29  ;;  %v2002_v7 = vld [vmem:[#allocation7 + $0x188] ss:$16 sps:$4 sm:$0xff]   ;;  %v2010_v8 = vld [vmem:[#allocation7 + $0x1ac] ss:$16 sps:$4 sm:$0xff]   ;;  %v2013_v10 = vld [vmem:[#allocation7 + $0x1c4] ss:$16 sps:$4 sm:$0xff]  }
  0x63   :  { %v2008_v9 = vld [vmem:[#allocation7 + $0x1a8] ss:$16 sps:$4 sm:$0xff]   ;;  %v2016_v11 = vld [vmem:[#allocation7 + $0x1cc] ss:$16 sps:$4 sm:$0xff]   ;;  %v2011_v12 = vld [vmem:[#allocation7 + $0x1c0] ss:$16 sps:$4 sm:$0xff]  }
  0x64   :  { %v2014_v13 = vld [vmem:[#allocation7 + $0x1c8] ss:$16 sps:$4 sm:$0xff]   ;;  %v2019_v14 = vld [vmem:[#allocation7 + $0x1e4] ss:$16 sps:$4 sm:$0xff]   ;;  %v2022_v15 = vld [vmem:[#allocation7 + $0x1ec] ss:$16 sps:$4 sm:$0xff]  }
  0x65   :  { %1105 = vmatpush1.bf16.msra.mxu0 %v1939_v26  ;;  %1191 = vmatpush1.bf16.msra.mxu1 %v1942_v32  ;;  %v2017_v16 = vld [vmem:[#allocation7 + $0x1e0] ss:$16 sps:$4 sm:$0xff]   ;;  %v2020_v17 = vld [vmem:[#allocation7 + $0x1e8] ss:$16 sps:$4 sm:$0xff]   ;;  %v2025_v18 = vld [vmem:[#allocation7 + $0x204] ss:$16 sps:$4 sm:$0xff]  }
  0x66   :  { %1106 = vmatprep.subr.bf16.mxu0 %v1947_v27  ;;  %1192 = vmatprep.subr.bf16.mxu1 %v1950_v33  ;;  %v2028_v19 = vld [vmem:[#allocation7 + $0x20c] ss:$16 sps:$4 sm:$0xff]   ;;  %v2390_v21 = vshrl.u32 %v103_v20, 7  ;;  %v101_v23 = vld [vmem:[%s2439_s2] sm:$0xf]  ;;  %s1636_s30 = sshll.u32 %s2278_s29, 4  ;;  %s1637_s30 = int_to_ptr.vmem [resolvable:$true] %s1636_s30 }
  0x67   :  { %v2062_v20 = vld [vmem:[#allocation7 + $0x2c8] ss:$16 sps:$4 sm:$0xff]   ;;  %p2244_p5 = scmp.lt.s32.totalorder %s1637_s30, %s1637_s30 }
  0x68   :  { %v105_v22 = vsub.s32 0, %v2390_v21  ;;  %v109_v24 = vsub.s32 1, %v2390_v21  ;;  %v113_v28 = vsub.s32 2, %v2390_v21 }
  0x69   :  { %1107 = vmatpush1.bf16.msra.mxu0 %v1945_v30  ;;  %1193 = vmatpush1.bf16.msra.mxu1 %v1948_v36 }
  0x6a   :  { %1108 = vmatprep.subr.bf16.mxu0 %v1953_v31  ;;  %1194 = vmatprep.subr.bf16.mxu1 %v1956_v37  ;;  %v106_v25 = vrot.slane %v101_v23, %v105_v22  ;;  %v110_v26 = vrot.slane %v101_v23, %v109_v24  ;;  %v117_v31 = vsub.s32 3, %v2390_v21  ;;  %v114_v37 = vrot.slane %v101_v23, %v113_v28 }
  0x6d   :  { %1109 = vmatpush1.bf16.msra.mxu0 %v1951_v34  ;;  %1195 = vmatpush1.bf16.msra.mxu1 %v1954_v40  ;;  %v118_v40 = vrot.slane %v101_v23, %v117_v31  ;;  %v2067_v23 = vld [vmem:[#allocation7 + $0x2e4] ss:$16 sps:$4 sm:$0xff]  }
  0x6e   :  { %1110 = vmatprep.subr.bf16.mxu0 %v1959_v35  ;;  %1196 = vmatprep.subr.bf16.mxu1 %v1962_v41 }
  0x71   :  { %1111 = vmatpush1.bf16.msra.mxu0 %v1957_v38  ;;  %1197 = vmatpush1.bf16.msra.mxu1 %v1960_v44 }
  0x72   :  { %1112 = vmatprep.subr.bf16.mxu0 %v1965_v39  ;;  %1198 = vmatprep.subr.bf16.mxu1 %v1968_v45 }
  0x75   :  { %1113 = vmatpush1.bf16.msra.mxu0 %v1963_v42  ;;  %1199 = vmatpush1.bf16.msra.mxu1 %v1966_v48 }
  0x76   :  { %1114 = vmatprep.subr.bf16.mxu0 %v1971_v43  ;;  %1200 = vmatprep.subr.bf16.mxu1 %v1974_v49 }
  0x79   :  { %1115 = vmatpush1.bf16.msra.mxu0 %v1969_v46  ;;  %1201 = vmatpush1.bf16.msra.mxu1 %v1972_v51  ;;  %v2023_v46 = vld [vmem:[#allocation7 + $0x200] ss:$16 sps:$4 sm:$0xff]   ;;  %v2034_v51 = vld [vmem:[#allocation7 + $0x22c] ss:$16 sps:$4 sm:$0xff]  }
  0x7a   :  { %1116 = vmatprep.subr.bf16.mxu0 %v1977_v47  ;;  %1202 = vmatprep.subr.bf16.mxu1 %v1980_v53  ;;  %v2026_v47 = vld [vmem:[#allocation7 + $0x208] ss:$16 sps:$4 sm:$0xff]  }
  0x7d   :  { %1117 = vmatpush1.bf16.msra.mxu0 %v1975_v50  ;;  %1203 = vmatpush1.bf16.msra.mxu1 %v1978_v56  ;;  %v2031_v50 = vld [vmem:[#allocation7 + $0x224] ss:$16 sps:$4 sm:$0xff]  }
  0x7e   :  { %1118 = vmatprep.subr.bf16.mxu0 %v1983_v52  ;;  %1204 = vmatprep.subr.bf16.mxu1 %v1986_v57 }
  0x81   :  { %1119 = vmatpush1.bf16.msra.mxu0 %v1981_v54  ;;  %1205 = vmatpush1.bf16.msra.mxu1 %v1984_v60  ;;  %v2032_v60 = vld [vmem:[#allocation7 + $0x228] ss:$16 sps:$4 sm:$0xff]  }
  0x82   :  { %1120 = vmatprep.subr.bf16.mxu0 %v1989_v55  ;;  %1206 = vmatprep.subr.bf16.mxu1 %v1992_v61 }
  0x85   :  { %1121 = vmatpush1.bf16.msra.mxu0 %v1987_v58  ;;  %1207 = vmatpush1.bf16.msra.mxu1 %v1990_v0 }
  0x86   :  { %1122 = vmatprep.subr.bf16.mxu0 %v1995_v59  ;;  %1208 = vmatprep.subr.bf16.mxu1 %v1998_v1  ;;  %v2029_v59 = vld [vmem:[#allocation7 + $0x220] ss:$16 sps:$4 sm:$0xff]  }
  0x89   :  { %1123 = vmatpush1.bf16.msra.mxu0 %v1993_v62  ;;  %1209 = vmatpush1.bf16.msra.mxu1 %v1996_v4  ;;  %v2037_v62 = vld [vmem:[#allocation7 + $0x244] ss:$16 sps:$4 sm:$0xff]   ;;  %v2038_v4 = vld [vmem:[#allocation7 + $0x248] ss:$16 sps:$4 sm:$0xff]  }
  0x8a   :  { %1124 = vmatprep.subr.bf16.mxu0 %v2001_v63  ;;  %1210 = vmatprep.subr.bf16.mxu1 %v2004_v5  ;;  %v2040_v63 = vld [vmem:[#allocation7 + $0x24c] ss:$16 sps:$4 sm:$0xff]   ;;  %v2043_v5 = vld [vmem:[#allocation7 + $0x264] ss:$16 sps:$4 sm:$0xff]  }
  0x8d   :  { %1125 = vmatpush1.bf16.msra.mxu0 %v1999_v2  ;;  %1211 = vmatpush1.bf16.msra.mxu1 %v2002_v7  ;;  %v2041_v7 = vld [vmem:[#allocation7 + $0x260] ss:$16 sps:$4 sm:$0xff]  }
  0x8e   :  { %1126 = vmatprep.subr.bf16.mxu0 %v2007_v3  ;;  %1212 = vmatprep.subr.bf16.mxu1 %v2010_v8  ;;  %v2035_v3 = vld [vmem:[#allocation7 + $0x240] ss:$16 sps:$4 sm:$0xff]   ;;  %v2044_v8 = vld [vmem:[#allocation7 + $0x268] ss:$16 sps:$4 sm:$0xff]  }
  0x91   :  { %1127 = vmatpush1.bf16.msra.mxu0 %v2005_v6  ;;  %1213 = vmatpush1.bf16.msra.mxu1 %v2008_v9  ;;  %v2046_v6 = vld [vmem:[#allocation7 + $0x26c] ss:$16 sps:$4 sm:$0xff]   ;;  %v2049_v9 = vld [vmem:[#allocation7 + $0x284] ss:$16 sps:$4 sm:$0xff]  }
  0x92   :  { %1128 = vmatprep.subr.bf16.mxu0 %v2013_v10  ;;  %1214 = vmatprep.subr.bf16.mxu1 %v2016_v11  ;;  %v2052_v10 = vld [vmem:[#allocation7 + $0x28c] ss:$16 sps:$4 sm:$0xff]   ;;  %v2047_v11 = vld [vmem:[#allocation7 + $0x280] ss:$16 sps:$4 sm:$0xff]  }
  0x95   :  { %1129 = vmatpush1.bf16.msra.mxu0 %v2011_v12  ;;  %1215 = vmatpush1.bf16.msra.mxu1 %v2014_v13  ;;  %v2050_v12 = vld [vmem:[#allocation7 + $0x288] ss:$16 sps:$4 sm:$0xff]   ;;  %v2055_v13 = vld [vmem:[#allocation7 + $0x2a4] ss:$16 sps:$4 sm:$0xff]  }
  0x96   :  { %1130 = vmatprep.subr.bf16.mxu0 %v2019_v14  ;;  %1216 = vmatprep.subr.bf16.mxu1 %v2022_v15  ;;  %v2058_v14 = vld [vmem:[#allocation7 + $0x2ac] ss:$16 sps:$4 sm:$0xff]   ;;  %v2053_v15 = vld [vmem:[#allocation7 + $0x2a0] ss:$16 sps:$4 sm:$0xff]  }
  0x99   :  { %1131 = vmatpush1.bf16.msra.mxu0 %v2017_v16  ;;  %1217 = vmatpush1.bf16.msra.mxu1 %v2020_v17  ;;  %v2056_v16 = vld [vmem:[#allocation7 + $0x2a8] ss:$16 sps:$4 sm:$0xff]   ;;  %v2061_v17 = vld [vmem:[#allocation7 + $0x2c4] ss:$16 sps:$4 sm:$0xff]  }
  0x9a   :  { %1143 = vmatprep.subr.bf16.mxu0 %v2025_v18  ;;  %1229 = vmatprep.subr.bf16.mxu1 %v2028_v19  ;;  %v2064_v18 = vld [vmem:[#allocation7 + $0x2cc] ss:$16 sps:$4 sm:$0xff]   ;;  %v2059_v19 = vld [vmem:[#allocation7 + $0x2c0] ss:$16 sps:$4 sm:$0xff]  }
 0x12f   :  { %v246_v27 = vpop.f32.mrb[0].mxu0  ;;  %v289_v44 = vpop.f32.mrb[0].mxu1 }
 0x130   :  { %v247_v29 = vadd.f32 %v246_v27, %v106_v25  ;;  %v248_v30 = vpop.f32.mrb[1].mxu0  ;;  %v290_v48 = vadd.f32 %v289_v44, %v114_v37  ;;  %v291_v49 = vpop.f32.mrb[1].mxu1  ;;  %v2068_v27 = vld [vmem:[#allocation7 + $0x2e8] ss:$16 sps:$4 sm:$0xff]   ;;  %v2089_v44 = vld [vmem:[#allocation7 + $0x360] ss:$16 sps:$4 sm:$0xff]  }
 0x131   :  { %v249_v32 = vadd.f32 %v248_v30, %v110_v26  ;;  %v250_v33 = vpop.f32.mrb[2].mxu0  ;;  %v292_v52 = vadd.f32 %v291_v49, %v118_v40  ;;  %v293_v53 = vpop.f32.mrb[2].mxu1  ;;  %v2076_v30 = vld [vmem:[#allocation7 + $0x30c] ss:$16 sps:$4 sm:$0xff]   ;;  %v2098_v49 = vld [vmem:[#allocation7 + $0x388] ss:$16 sps:$4 sm:$0xff]  }
 0x132   :  { %v251_v34 = vadd.f32 %v250_v33, %v106_v25  ;;  %v252_v35 = vpop.f32.mrb[3].mxu0  ;;  %v298_v38 = vmax.f32 %v247_v29, 0.0  ;;  %v300_v54 = vmax.f32 %v290_v48, 0.0  ;;  %v294_v55 = vadd.f32 %v293_v53, %v114_v37  ;;  %v295_v56 = vpop.f32.mrb[3].mxu1  ;;  %v2070_v25 = vld [vmem:[#allocation7 + $0x2ec] ss:$16 sps:$4 sm:$0xff]  }
 0x133   :  { %v253_v36 = vadd.f32 %v252_v35, %v110_v26  ;;  %v299_v41 = vmax.f32 %v249_v32, 0.0  ;;  %v301_v57 = vmax.f32 %v292_v52, 0.0  ;;  %v296_v58 = vadd.f32 %v295_v56, %v118_v40  ;;  %v2065_v26 = vld [vmem:[#allocation7 + $0x2e0] ss:$16 sps:$4 sm:$0xff]   ;;  %v2073_v29 = vld [vmem:[#allocation7 + $0x304] ss:$16 sps:$4 sm:$0xff]  }
 0x134   :  { %v302_v39 = vmax.f32 %v251_v34, 0.0  ;;  %v304_v61 = vmax.f32 %v294_v55, 0.0  ;;  %v2071_v32 = vld [vmem:[#allocation7 + $0x300] ss:$16 sps:$4 sm:$0xff]   ;;  %v2074_v33 = vld [vmem:[#allocation7 + $0x308] ss:$16 sps:$4 sm:$0xff]  }
 0x135   :  { %v303_v42 = vmax.f32 %v253_v36, 0.0  ;;  %v305_v0 = vmax.f32 %v296_v58, 0.0  ;;  %v2079_v34 = vld [vmem:[#allocation7 + $0x324] ss:$16 sps:$4 sm:$0xff]   ;;  %v2082_v35 = vld [vmem:[#allocation7 + $0x32c] ss:$16 sps:$4 sm:$0xff]  }
 0x136   :  { %v306_v43 = vpack.c.bf16 %v302_v39, %v298_v38  ;;  %v2407_v1 = vpack.c.bf16 %v304_v61, %v300_v54  ;;  %v2077_v36 = vld [vmem:[#allocation7 + $0x320] ss:$16 sps:$4 sm:$0xff]   ;;  %v2080_v37 = vld [vmem:[#allocation7 + $0x328] ss:$16 sps:$4 sm:$0xff]   ;;  %v2085_v38 = vld [vmem:[#allocation7 + $0x344] ss:$16 sps:$4 sm:$0xff]  }
 0x137   :  { %v307_v45 = vpack.c.bf16 %v303_v42, %v299_v41  ;;  %v309_v2 = vpack.c.bf16 %v305_v0, %v301_v57  ;;  %v2088_v39 = vld [vmem:[#allocation7 + $0x34c] ss:$16 sps:$4 sm:$0xff]   ;;  %v2083_v40 = vld [vmem:[#allocation7 + $0x340] ss:$16 sps:$4 sm:$0xff]   ;;  %v2086_v41 = vld [vmem:[#allocation7 + $0x348] ss:$16 sps:$4 sm:$0xff]  }
 0x138   :  { %v2091_v42 = vld [vmem:[#allocation7 + $0x364] ss:$16 sps:$4 sm:$0xff]   ;;  %v2095_v48 = vld [vmem:[#allocation7 + $0x380] ss:$16 sps:$4 sm:$0xff]   ;;  %v2104_v53 = vld [vmem:[#allocation7 + $0x3a8] ss:$16 sps:$4 sm:$0xff]  }
 0x139   :  { %1132 = vmatprep.mubr.bf16.mxu0 %v307_v45  ;;  %1218 = vmatprep.mubr.bf16.mxu1 %v307_v45  ;;  %v2092_v45 = vld [vmem:[#allocation7 + $0x368] ss:$16 sps:$4 sm:$0xff]   ;;  %v2101_v52 = vld [vmem:[#allocation7 + $0x3a0] ss:$16 sps:$4 sm:$0xff]   ;;  %v2109_v54 = vld [vmem:[#allocation7 + $0x3c4] ss:$16 sps:$4 sm:$0xff]  }
 0x13a   :  { %1133 = vmatmul.mubr.bf16.vlgmr.msra.gmra.mrb[4].mxu0 %v306_v43  ;;  %1219 = vmatmul.mubr.bf16.vlgmr.msra.gmra.mrb[4].mxu1 %v306_v43  ;;  %v2094_v43 = vld [vmem:[#allocation7 + $0x36c] ss:$16 sps:$4 sm:$0xff]   ;;  %v2107_v56 = vld [vmem:[#allocation7 + $0x3c0] ss:$16 sps:$4 sm:$0xff]   ;;  %v2110_v57 = vld [vmem:[#allocation7 + $0x3c8] ss:$16 sps:$4 sm:$0xff]  }
 0x13b   :  { %1144 = vmatpush1.bf16.msra.mxu0 %v2023_v46  ;;  %1230 = vmatpush1.bf16.msra.mxu1 %v2026_v47  ;;  %v2097_v46 = vld [vmem:[#allocation7 + $0x384] ss:$16 sps:$4 sm:$0xff]   ;;  %v2100_v47 = vld [vmem:[#allocation7 + $0x38c] ss:$16 sps:$4 sm:$0xff]   ;;  %v2116_v61 = vld [vmem:[#allocation7 + $0x3e8] ss:$16 sps:$4 sm:$0xff]  }
 0x13c   :  { %1145 = vmatprep.subr.bf16.mxu0 %v2031_v50  ;;  %1231 = vmatprep.subr.bf16.mxu1 %v2034_v51  ;;  %v2103_v50 = vld [vmem:[#allocation7 + $0x3a4] ss:$16 sps:$4 sm:$0xff]   ;;  %v2106_v51 = vld [vmem:[#allocation7 + $0x3ac] ss:$16 sps:$4 sm:$0xff]  }
 0x13d   :  { %1175 = vmatprep.mubr.bf16.mxu0 %v309_v2  ;;  %1261 = vmatprep.mubr.bf16.mxu1 %v309_v2  ;;  %v2112_v55 = vld [vmem:[#allocation7 + $0x3cc] ss:$16 sps:$4 sm:$0xff]   ;;  %v2115_v58 = vld [vmem:[#allocation7 + $0x3e4] ss:$16 sps:$4 sm:$0xff]  }
 0x13e   :  { %v2121_v0 = vld [vmem:[#allocation8] sm:$0xff]  }
 0x13f   :  { %1146 = vmatpush1.bf16.msra.mxu0 %v2029_v59  ;;  %1232 = vmatpush1.bf16.msra.mxu1 %v2032_v60  ;;  %v2118_v59 = vld [vmem:[#allocation7 + $0x3ec] ss:$16 sps:$4 sm:$0xff]   ;;  %v2113_v60 = vld [vmem:[#allocation7 + $0x3e0] ss:$16 sps:$4 sm:$0xff]  }
 0x140   :  { %1147 = vmatprep.subr.bf16.mxu0 %v2037_v62  ;;  %1233 = vmatprep.subr.bf16.mxu1 %v2040_v63  ;;  %v2119_v62 = vld [vmem:[#allocation8 + $0x40] sm:$0xff]  }
 0x141   :  { %v2120_v63 = vld [vmem:[#allocation8 + $0xc0] sm:$0xff]  }
 0x142   :  { %v2122_v2 = vld [vmem:[#allocation8 + $0x80] sm:$0xff]  }
 0x143   :  { %1148 = vmatpush1.bf16.msra.mxu0 %v2035_v3  ;;  %1234 = vmatpush1.bf16.msra.mxu1 %v2038_v4  ;;  %v2123_v3 = vld [vmem:[#allocation8 + $0x48] sm:$0xff]  }
 0x144   :  { %1149 = vmatprep.subr.bf16.mxu0 %v2043_v5  ;;  %1235 = vmatprep.subr.bf16.mxu1 %v2046_v6  ;;  %v2124_v4 = vld [vmem:[#allocation8 + $0xc8] sm:$0xff]  }
 0x145   :  { %v2125_v5 = vld [vmem:[#allocation8 + $0x8] sm:$0xff]  }
 0x146   :  { %v2126_v6 = vld [vmem:[#allocation8 + $0x88] sm:$0xff]  }
 0x147   :  { %1150 = vmatpush1.bf16.msra.mxu0 %v2041_v7  ;;  %1236 = vmatpush1.bf16.msra.mxu1 %v2044_v8  ;;  %v2127_v7 = vld [vmem:[#allocation8 + $0x50] sm:$0xff]  }
 0x148   :  { %1151 = vmatprep.subr.bf16.mxu0 %v2049_v9  ;;  %1237 = vmatprep.subr.bf16.mxu1 %v2052_v10  ;;  %v2128_v8 = vld [vmem:[#allocation8 + $0xd0] sm:$0xff]  }
 0x149   :  { %v2129_v9 = vld [vmem:[#allocation8 + $0x10] sm:$0xff]  }
 0x14a   :  { %v2130_v10 = vld [vmem:[#allocation8 + $0x90] sm:$0xff]  }
 0x14b   :  { %1152 = vmatpush1.bf16.msra.mxu0 %v2047_v11  ;;  %1238 = vmatpush1.bf16.msra.mxu1 %v2050_v12  ;;  %v2131_v11 = vld [vmem:[#allocation8 + $0x58] sm:$0xff]  }
 0x14c   :  { %1153 = vmatprep.subr.bf16.mxu0 %v2055_v13  ;;  %1239 = vmatprep.subr.bf16.mxu1 %v2058_v14  ;;  %v2132_v12 = vld [vmem:[#allocation8 + $0xd8] sm:$0xff]   ;;  %v2135_v14 = vld [vmem:[#allocation8 + $0x60] sm:$0xff]  }
 0x14d   :  { %v2133_v13 = vld [vmem:[#allocation8 + $0x18] sm:$0xff]  }
 0x14f   :  { %1154 = vmatpush1.bf16.msra.mxu0 %v2053_v15  ;;  %1240 = vmatpush1.bf16.msra.mxu1 %v2056_v16  ;;  %v2136_v15 = vld [vmem:[#allocation8 + $0xe0] sm:$0xff]  }
 0x150   :  { %1155 = vmatprep.subr.bf16.mxu0 %v2061_v17  ;;  %1241 = vmatprep.subr.bf16.mxu1 %v2064_v18  ;;  %v2137_v16 = vld [vmem:[#allocation8 + $0x20] sm:$0xff]   ;;  %v2139_v18 = vld [vmem:[#allocation8 + $0x68] sm:$0xff]  }
 0x151   :  { %v2138_v17 = vld [vmem:[#allocation8 + $0xa0] sm:$0xff]  }
 0x153   :  { %1156 = vmatpush1.bf16.msra.mxu0 %v2059_v19  ;;  %1242 = vmatpush1.bf16.msra.mxu1 %v2062_v20  ;;  %v2140_v19 = vld [vmem:[#allocation8 + $0xe8] sm:$0xff]  }
 0x154   :  { %1157 = vmatprep.subr.bf16.mxu0 %v2067_v23  ;;  %1243 = vmatprep.subr.bf16.mxu1 %v2070_v25  ;;  %v2141_v20 = vld [vmem:[#allocation8 + $0x28] sm:$0xff]   ;;  %v2143_v25 = vld [vmem:[#allocation8 + $0x70] sm:$0xff]  }
 0x155   :  { %v2142_v23 = vld [vmem:[#allocation8 + $0xa8] sm:$0xff]  }
 0x157   :  { %1158 = vmatpush1.bf16.msra.mxu0 %v2065_v26  ;;  %1244 = vmatpush1.bf16.msra.mxu1 %v2068_v27  ;;  %v2144_v26 = vld [vmem:[#allocation8 + $0xf0] sm:$0xff]  }
 0x158   :  { %1159 = vmatprep.subr.bf16.mxu0 %v2073_v29  ;;  %1245 = vmatprep.subr.bf16.mxu1 %v2076_v30  ;;  %v2145_v27 = vld [vmem:[#allocation8 + $0x30] sm:$0xff]   ;;  %v2147_v30 = vld [vmem:[#allocation8 + $0x78] sm:$0xff]  }
 0x159   :  { %v2146_v29 = vld [vmem:[#allocation8 + $0xb0] sm:$0xff]  }
 0x15b   :  { %1160 = vmatpush1.bf16.msra.mxu0 %v2071_v32  ;;  %1246 = vmatpush1.bf16.msra.mxu1 %v2074_v33  ;;  %v2148_v32 = vld [vmem:[#allocation8 + $0xf8] sm:$0xff]  }
 0x15c   :  { %1161 = vmatprep.subr.bf16.mxu0 %v2079_v34  ;;  %1247 = vmatprep.subr.bf16.mxu1 %v2082_v35  ;;  %v2149_v33 = vld [vmem:[#allocation8 + $0x38] sm:$0xff]  }
 0x15d   :  { %v2150_v34 = vld [vmem:[#allocation8 + $0xb8] sm:$0xff]  }
 0x15e   :  { %v438_v35 = vld [vmem:[%s2441_s4] sm:$0xf] }
 0x15f   :  { %1162 = vmatpush1.bf16.msra.mxu0 %v2077_v36  ;;  %1248 = vmatpush1.bf16.msra.mxu1 %v2080_v37  ;;  %v443_v36 = vrot.slane %v438_v35, %v105_v22  ;;  %v451_v37 = vrot.slane %v438_v35, %v113_v28 }
 0x160   :  { %1163 = vmatprep.subr.bf16.mxu0 %v2085_v38  ;;  %1249 = vmatprep.subr.bf16.mxu1 %v2088_v39  ;;  %v447_v38 = vrot.slane %v438_v35, %v109_v24  ;;  %v455_v39 = vrot.slane %v438_v35, %v117_v31 }
 0x163   :  { %1164 = vmatpush1.bf16.msra.mxu0 %v2083_v40  ;;  %1250 = vmatpush1.bf16.msra.mxu1 %v2086_v41 }
 0x164   :  { %1165 = vmatprep.subr.bf16.mxu0 %v2091_v42  ;;  %1251 = vmatprep.subr.bf16.mxu1 %v2094_v43 }
 0x167   :  { %1166 = vmatpush1.bf16.msra.mxu0 %v2089_v44  ;;  %1252 = vmatpush1.bf16.msra.mxu1 %v2092_v45 }
 0x168   :  { %1167 = vmatprep.subr.bf16.mxu0 %v2097_v46  ;;  %1253 = vmatprep.subr.bf16.mxu1 %v2100_v47 }
 0x16b   :  { %1168 = vmatpush1.bf16.msra.mxu0 %v2095_v48  ;;  %1254 = vmatpush1.bf16.msra.mxu1 %v2098_v49 }
 0x16c   :  { %1169 = vmatprep.subr.bf16.mxu0 %v2103_v50  ;;  %1255 = vmatprep.subr.bf16.mxu1 %v2106_v51 }
 0x16f   :  { %1170 = vmatpush1.bf16.msra.mxu0 %v2101_v52  ;;  %1256 = vmatpush1.bf16.msra.mxu1 %v2104_v53 }
 0x170   :  { %1171 = vmatprep.subr.bf16.mxu0 %v2109_v54  ;;  %1257 = vmatprep.subr.bf16.mxu1 %v2112_v55 }
 0x173   :  { %1172 = vmatpush1.bf16.msra.mxu0 %v2107_v56  ;;  %1258 = vmatpush1.bf16.msra.mxu1 %v2110_v57 }
 0x174   :  { %1173 = vmatprep.subr.bf16.mxu0 %v2115_v58  ;;  %1259 = vmatprep.subr.bf16.mxu1 %v2118_v59 }
 0x177   :  { %1174 = vmatpush1.bf16.msra.mxu0 %v2113_v60  ;;  %1260 = vmatpush1.bf16.msra.mxu1 %v2116_v61 }
 0x178   :  { %1830 = vmatprep.subr.bf16.mxu0 %v2119_v62  ;;  %1852 = vmatprep.subr.bf16.mxu1 %v2120_v63 }
 0x17a   :  { %1176 = vmatmul.mubr.bf16.vlgmr.msra.gmra.mrb[4].mxu0 %v2407_v1  ;;  %1262 = vmatmul.mubr.bf16.vlgmr.msra.gmra.mrb[4].mxu1 %v2407_v1  ;;  %v2134_v1 = vld [vmem:[#allocation8 + $0x98] sm:$0xff]  }
 0x17b   :  { %1831 = vmatpush3.bf16.msra.mxu0 %v2121_v0  ;;  %1853 = vmatpush3.bf16.msra.mxu1 %v2122_v2  ;;  %v1797_v2 = vld [vmem:[%s2443_s6] ss:$0 sm:$0xff]  ;;  %s2239_s6 = scalar_lea.vmem %s1637_s30, 256 }
 0x17c   :  { %1832 = vmatprep.subr.bf16.mxu0 %v2123_v3  ;;  %1854 = vmatprep.subr.bf16.mxu1 %v2124_v4  ;;  %p2240_p4 = scmp.ne.s32.totalorder %s1637_s30, %s2239_s6  ;;  %p2245_p6 = scmp.lt.s32.totalorder %s2239_s6, %s2239_s6 }
 0x17e   :  { %p2246_p7 = por %p2245_p6, %p2244_p5 }
 0x17f   :  { %1833 = vmatpush3.bf16.msra.mxu0 %v2125_v5  ;;  %1855 = vmatpush3.bf16.msra.mxu1 %v2126_v6 }
 0x180   :  { %1834 = vmatprep.subr.bf16.mxu0 %v2127_v7  ;;  %1856 = vmatprep.subr.bf16.mxu1 %v2128_v8  ;;  %p2247_p8 = pnand %p2246_p7, %p2240_p4 }
 0x183   :  { %1835 = vmatpush3.bf16.msra.mxu0 %v2129_v9  ;;  %1857 = vmatpush3.bf16.msra.mxu1 %v2130_v10 }
 0x184   :  { %1836 = vmatprep.subr.bf16.mxu0 %v2131_v11  ;;  %1858 = vmatprep.subr.bf16.mxu1 %v2132_v12 }
 0x187   :  { %1837 = vmatpush3.bf16.msra.mxu0 %v2133_v13  ;;  %1859 = vmatpush3.bf16.msra.mxu1 %v2134_v1 }
 0x188   :  { %1838 = vmatprep.subr.bf16.mxu0 %v2135_v14  ;;  %1860 = vmatprep.subr.bf16.mxu1 %v2136_v15 }
 0x18b   :  { %1839 = vmatpush3.bf16.msra.mxu0 %v2137_v16  ;;  %1861 = vmatpush3.bf16.msra.mxu1 %v2138_v17 }
 0x18c   :  { %1840 = vmatprep.subr.bf16.mxu0 %v2139_v18  ;;  %1862 = vmatprep.subr.bf16.mxu1 %v2140_v19 }
 0x18f   :  { %1841 = vmatpush3.bf16.msra.mxu0 %v2141_v20  ;;  %1863 = vmatpush3.bf16.msra.mxu1 %v2142_v23 }
 0x190   :  { %1842 = vmatprep.subr.bf16.mxu0 %v2143_v25  ;;  %1864 = vmatprep.subr.bf16.mxu1 %v2144_v26 }
 0x193   :  { %1843 = vmatpush3.bf16.msra.mxu0 %v2145_v27  ;;  %1865 = vmatpush3.bf16.msra.mxu1 %v2146_v29 }
 0x194   :  { %1844 = vmatprep.subr.bf16.mxu0 %v2147_v30  ;;  %1866 = vmatprep.subr.bf16.mxu1 %v2148_v32 }
 0x197   :  { %1845 = vmatpush3.bf16.msra.mxu0 %v2149_v33  ;;  %1867 = vmatpush3.bf16.msra.mxu1 %v2150_v34 }
 0x24d   :  { %v1177_v40 = vpop.f32.mrb[4].mxu0  ;;  %v1263_v41 = vpop.f32.mrb[4].mxu1 }
 0x24e   :  { %v1874_v42 = vadd.f32 %v1177_v40, %v443_v36  ;;  %v1878_v43 = vadd.f32 %v1263_v41, %v451_v37  ;;  %v1179_v44 = vpop.f32.mrb[5].mxu0  ;;  %v1265_v45 = vpop.f32.mrb[5].mxu1 }
 0x24f   :  { %v1875_v46 = vadd.f32 %v1179_v44, %v447_v38  ;;  %v1879_v47 = vadd.f32 %v1265_v45, %v455_v39  ;;  %v1181_v48 = vpop.f32.mrb[6].mxu0  ;;  %v1267_v49 = vpop.f32.mrb[6].mxu1 }
 0x250   :  { %v1876_v22 = vadd.f32 %v1181_v48, %v443_v36  ;;  %v1880_v50 = vadd.f32 %v1267_v49, %v451_v37  ;;  %v1183_v51 = vpop.f32.mrb[7].mxu0  ;;  %v1269_v28 = vpop.f32.mrb[7].mxu1  ;;  %v1272_v24 = vmax.f32 %v1874_v42, 0.0  ;;  %v1274_v54 = vmax.f32 %v1878_v43, 0.0 }
 0x251   :  { %v1877_v52 = vadd.f32 %v1183_v51, %v447_v38  ;;  %v1881_v53 = vadd.f32 %v1269_v28, %v455_v39  ;;  %v1273_v55 = vmax.f32 %v1875_v46, 0.0  ;;  %v1275_v56 = vmax.f32 %v1879_v47, 0.0 }
 0x252   :  { %v1276_v21 = vmax.f32 %v1876_v22, 0.0  ;;  %v1278_v31 = vmax.f32 %v1880_v50, 0.0 }
 0x253   :  { %v1277_v57 = vmax.f32 %v1877_v52, 0.0  ;;  %v1279_v58 = vmax.f32 %v1881_v53, 0.0 }
 0x254   :  { %v1280_v59 = vpack.c.bf16 %v1276_v21, %v1272_v24  ;;  %v1282_v60 = vpack.c.bf16 %v1278_v31, %v1274_v54 }
 0x255   :  { %v1281_v61 = vpack.c.bf16 %v1277_v57, %v1273_v55  ;;  %v1283_v62 = vpack.c.bf16 %v1279_v58, %v1275_v56 }
 0x257   :  { %1579 = vmatprep.mubr.bf16.mxu0 %v1281_v61  ;;  %1620 = vmatprep.mubr.bf16.mxu1 %v1283_v62 }
 0x258   :  { %1580 = vmatmul.mubr.bf16.vlgmr.msra.gmra.mrb[8].mxu0 %v1280_v59  ;;  %1621 = vmatmul.mubr.bf16.vlgmr.msra.gmra.mrb[8].mxu1 %v1282_v60 }
 0x32b   :  { %v1846_v63 = vpop.f32.mrb[8].mxu0  ;;  %v1868_v0 = vpop.f32.mrb[8].mxu1 }
 0x32c   :  { %v1847_v3 = vpop.f32.mrb[9].mxu0  ;;  %v1869_v4 = vpop.f32.mrb[9].mxu1 }
 0x32d   :  { %v1848_v5 = vadd.f32 %v1847_v3, %v1846_v63  ;;  %v1870_v6 = vadd.f32 %v1869_v4, %v1868_v0  ;;  %v1849_v7 = vpop.f32.mrb[10].mxu0  ;;  %v1871_v8 = vpop.f32.mrb[10].mxu1 }
 0x32e   :  { %v1850_v9 = vpop.f32.mrb[11].mxu0  ;;  %v1872_v10 = vpop.f32.mrb[11].mxu1 }
 0x32f   :  { %v1582_v11 = vadd.f32 %v1848_v5, %v1797_v2  ;;  %v1851_v12 = vadd.f32 %v1850_v9, %v1849_v7  ;;  %v1873_v13 = vadd.f32 %v1872_v10, %v1871_v8 }
 0x331   :  { %v1623_v1 = vadd.f32 %v1870_v6, %v1582_v11  ;;  %v1585_v14 = vadd.f32 %v1851_v12, %v1797_v2 }
 0x333   :  { %1629 = vst [vmem:[#allocation10] sm:$0xff] %v1623_v1  ;;  %v1626_v15 = vadd.f32 %v1873_v13, %v1585_v14 }
 0x335   :  { %1630 = vst [vmem:[#allocation10 + $0x8] sm:$0xff] %v1626_v15 }
 0x336   :  { %2250 = shalt.err (!%p2247_p8)
}
 0x337   :  { %s2251_s10 = scalar_lea.hbm %s2444_s7, 256 }
 0x338   :  { %p2252_p9 = scmp.ne.s32.totalorder %s2444_s7, %s2251_s10  ;;  %p2255_p10 = scmp.lt.u32.totalorder %s2251_s10, %s2444_s7 }
 0x33a   :  { %p2257_p11 = pnand %p2255_p10, %p2252_p9 }
 0x33c   :  { %2260 = shalt.err (!%p2257_p11)
}
 0x33d   :  { %s2279_s18 = smov 128   ;;  %s2280_s0 = smov 8  }
 0x33e   :  { %1642 = dma.vmem_to_hbm [thread:$0]  %s1637_s30, 256, %s2444_s7, [#allocation4], %s2279_s18, %s2279_s18, %s2280_s0  }
 0x33f   :  { %2267 = dma.done.wait [#allocation4], 256  }
 0x340   :  { %2268 = vsyncadd [#allocation4], 4294967040 }
 0x341   :  { %1646 = vsyncpa [#allocation3], 1 }
 0x342   :  { %1647 = vsyncpa [#allocation6], 1 }
 0x343   :  { %1648 = vsyncpa [#allocation9], 1 }
 0x344   :  { %1649 = vsyncpa [#allocation4], 1 }

</bundles_post_ra>
